<compile_context>
chip_gen: v6e
topology: v6e:2x2x1
jax: 0.10.0
libtpu: 0.0.40
codegen_flags: <defaults>
</compile_context>

<pallas_src>
import math
import jax
import jax.numpy as jnp
from jax import lax
from jax.experimental import pallas as pl
from jax.experimental.pallas import tpu as pltpu


# ---------------------------------------------------------------------------
# One-shot kernel: K / V projections of the (batch-independent) source tokens.
# ---------------------------------------------------------------------------
def kv_proj_kernel(s_ref, wk_ref, bk_ref, wv_ref, bv_ref, k_ref, v_ref):
    s = s_ref[...]                                                    # (S, d_llm) bf16
    k = jnp.dot(s, wk_ref[...], preferred_element_type=jnp.float32) + bk_ref[...]
    v = jnp.dot(s, wv_ref[...], preferred_element_type=jnp.float32) + bv_ref[...]
    k_ref[...] = k.astype(k_ref.dtype)
    v_ref[...] = v.astype(v_ref.dtype)


# ---------------------------------------------------------------------------
# Main kernel: fused (lab_proj o query_projection) -> per-head softmax
# cross-attention over the source tokens -> out_projection, for one row tile.
# ---------------------------------------------------------------------------
def make_reprogram_kernel(H, E):
    bf = jnp.bfloat16

    def kernel(x_ref, k_ref, v_ref,
               wq_ref, bq_ref,        # fused lab_proj o query_projection (scale folded)
               wo_ref, bo_ref,
               o_ref):
        rows = x_ref.shape[0]

        # fused query path: (rows, D_enc) @ (D_enc, H*E)  [bf16 operands, f32 acc]
        q = jnp.dot(x_ref[...], wq_ref[...],
                    preferred_element_type=jnp.float32) + bq_ref[...]

        # heads-first layout for one batched matmul over all heads
        qh = q.reshape(rows, H, E).transpose(1, 0, 2).astype(bf)      # (H, rows, E)
        k = k_ref[...]                                                # (H, S, E) bf16
        v = v_ref[...]                                                # (H, S, E) bf16

        # scores: contract last axes, batch over heads -> (H, rows, S)
        # (the 1/sqrt(E) softmax scale is already folded into wq/bq)
        scores = lax.dot_general(
            qh, k,
            dimension_numbers=(((2,), (2,)), ((0,), (0,))),
            preferred_element_type=jnp.float32)

        # max-stabilized softmax over S (f32); dropout is identity at eval
        scores = scores - jnp.max(scores, axis=-1, keepdims=True)
        p = jnp.exp(scores)
        a = p * pl.reciprocal(jnp.sum(p, axis=-1, keepdims=True), approx=True)

        # attention output: (H, rows, S) @ (H, S, E) -> (H, rows, E)
        out = lax.dot_general(
            a.astype(bf), v,
            dimension_numbers=(((2,), (1,)), ((0,), (0,))),
            preferred_element_type=jnp.float32)

        out_flat = out.transpose(1, 0, 2).reshape(rows, H * E)        # (rows, H*E)

        # out_projection: (rows, H*E) @ (H*E, d_llm)
        y = jnp.dot(out_flat.astype(bf), wo_ref[...],
                    preferred_element_type=jnp.float32) + bo_ref[...]
        o_ref[...] = y.astype(o_ref.dtype)

    return kernel


def medts_reprogram(lab_feats, src_emb, params, H, E, tile_rows=256):
    """lab_proj + ReprogrammingLayer forward via Pallas (flattened-row grid)."""
    B, L, D_enc = lab_feats.shape
    S, d_llm = src_emb.shape
    HE = H * E
    bf = jnp.bfloat16
    scale = 1.0 / math.sqrt(E)

    # ---- one-time host-side weight preparation -----------------------------
    # Compose lab_proj with query_projection (no nonlinearity between them and
    # the intermediate is unused elsewhere) and fold in the softmax scale:
    #   q = ((x Wlab^T + blab) Wq^T + bq) * scale
    #     = x (Wlab^T Wq^T * scale) + (blab Wq^T + bq) * scale
    w_q_fused = (params['w_lab'].T @ params['w_q'].T) * scale         # (D_enc, HE) f32
    b_q_fused = (params['b_lab'] @ params['w_q'].T + params['b_q']) * scale  # (1, HE)
    w_q_fused = w_q_fused.astype(bf)

    w_k_t = params['w_k'].T.astype(bf)          # (d_llm, HE)
    w_v_t = params['w_v'].T.astype(bf)          # (d_llm, HE)
    w_o_t = params['w_o'].T.astype(bf)          # (HE, d_llm)

    # Hoisted K/V projection: parameter-only, computed exactly once.
    k_flat, v_flat = pl.pallas_call(
        kv_proj_kernel,
        out_shape=(jax.ShapeDtypeStruct((S, HE), bf),
                   jax.ShapeDtypeStruct((S, HE), bf)),
    )(src_emb.astype(bf), w_k_t, params['b_k'], w_v_t, params['b_v'])
    # one-time relayout to heads-first (done in plain XLA, outside the grid)
    k_heads = k_flat.reshape(S, H, E).transpose(1, 0, 2)              # (H, S, E)
    v_heads = v_flat.reshape(S, H, E).transpose(1, 0, 2)              # (H, S, E)

    # Flatten batch into the row axis and pad to a tile multiple.
    BL = B * L
    x = lab_feats.reshape(BL, D_enc)
    tile = min(tile_rows, BL)
    pad = (-BL) % tile
    if pad:
        x = jnp.pad(x, ((0, pad), (0, 0)))
    R = BL + pad
    grid = (R // tile,)

    kernel = make_reprogram_kernel(H, E)

    out = pl.pallas_call(
        kernel,
        out_shape=jax.ShapeDtypeStruct((R, d_llm), jnp.float32),
        grid=grid,
        in_specs=[
            pl.BlockSpec((tile, D_enc), lambda r: (r, 0)),      # flattened rows
            pl.BlockSpec((H, S, E), lambda r: (0, 0, 0)),       # K (heads-first)
            pl.BlockSpec((H, S, E), lambda r: (0, 0, 0)),       # V (heads-first)
            pl.BlockSpec((D_enc, HE), lambda r: (0, 0)),        # fused query W
            pl.BlockSpec((1, HE), lambda r: (0, 0)),            # fused query b
            pl.BlockSpec((HE, d_llm), lambda r: (0, 0)),        # out W^T
            pl.BlockSpec((1, d_llm), lambda r: (0, 0)),         # out b
        ],
        out_specs=pl.BlockSpec((tile, d_llm), lambda r: (r, 0)),
        compiler_params=pltpu.CompilerParams(
            dimension_semantics=("parallel",),
            vmem_limit_bytes=64 * 1024 * 1024),
    )(x.astype(bf), k_heads, v_heads,
      w_q_fused, b_q_fused,
      w_o_t, params['b_o'])

    return out[:BL].reshape(B, L, d_llm)


def reference(lab_feats, src_emb, params, H, E):
    """Pure-JAX reference matching the PyTorch eval semantics (unfused
    projections), with the bf16-operand / f32-accumulation matmul precision."""
    bf, f32 = jnp.bfloat16, jnp.float32
    B, L, D_enc = lab_feats.shape
    S, d_llm = src_emb.shape
    HE = H * E

    x = lab_feats.reshape(B * L, D_enc).astype(bf)
    h = jnp.dot(x, params['w_lab'].T.astype(bf),
                preferred_element_type=f32) + params['b_lab']
    q = jnp.dot(h.astype(bf), params['w_q'].T.astype(bf),
                preferred_element_type=f32) + params['b_q']

    s = src_emb.astype(bf)
    k = (jnp.dot(s, params['w_k'].T.astype(bf),
                 preferred_element_type=f32) + params['b_k']).astype(bf)
    v = (jnp.dot(s, params['w_v'].T.astype(bf),
                 preferred_element_type=f32) + params['b_v']).astype(bf)

    qh = q.reshape(B * L, H, E).astype(bf)
    kh = k.reshape(S, H, E)
    vh = v.reshape(S, H, E)

    scores = jnp.einsum('lhe,she->hls', qh, kh,
                        preferred_element_type=f32) * (1.0 / math.sqrt(E))
    A = jax.nn.softmax(scores, axis=-1)
    out = jnp.einsum('hls,she->lhe', A.astype(bf), vh,
                     preferred_element_type=f32).reshape(B * L, HE)
    y = jnp.dot(out.astype(bf), params['w_o'].T.astype(bf),
                preferred_element_type=f32) + params['b_o']
    return y.reshape(B, L, d_llm)


if __name__ == "__main__":
    # Small, forward-consistent shapes.
    B, L, D_enc = 2, 8, 32      # batch, num_patch, prompt_encoder_hidden_size
    d_llm = 32                  # (synthetic) t5 hidden size
    H, E = 4, 8                 # n_heads, d_keys
    HE = H * E
    S0, S = 16, 8               # puzzle-token count, mapped source-token count
    T = 4                       # text tokens appended for mm_input
    vocab = 64

    key = jax.random.PRNGKey(0)
    ks = jax.random.split(key, 16)

    def lin(k, out_d, in_d):
        return jax.random.normal(k, (out_d, in_d), jnp.float32) * (1.0 / math.sqrt(in_d))

    params = {
        'w_lab': lin(ks[0], d_llm, D_enc),
        'b_lab': jax.random.normal(ks[1], (1, d_llm), jnp.float32) * 0.01,
        'w_q': lin(ks[2], HE, d_llm),
        'b_q': jax.random.normal(ks[3], (1, HE), jnp.float32) * 0.01,
        'w_k': lin(ks[4], HE, d_llm),
        'b_k': jax.random.normal(ks[5], (1, HE), jnp.float32) * 0.01,
        'w_v': lin(ks[6], HE, d_llm),
        'b_v': jax.random.normal(ks[7], (1, HE), jnp.float32) * 0.01,
        'w_o': lin(ks[8], d_llm, HE),
        'b_o': jax.random.normal(ks[9], (1, d_llm), jnp.float32) * 0.01,
    }

    # puzzle_embedding + mapping_layer (parameter-only setup, kept in plain JAX):
    # source = mapping_layer(puzzle.T).T
    puzzle_embedding = jax.random.normal(ks[10], (S0, d_llm), jnp.float32) * 0.02
    w_map = lin(ks[11], S, S0)
    b_map = jax.random.normal(ks[12], (S,), jnp.float32) * 0.01
    src_emb = (puzzle_embedding.T @ w_map.T + b_map).T          # (S, d_llm)

    # ts_encoder output (PatchTSTEncoder is external; see TODO at top).
    lab_feats_in = jax.random.normal(ks[13], (B, L, D_enc), jnp.float32)

    # Hot path on TPU via Pallas.
    lab_feats = medts_reprogram(lab_feats_in, src_emb, params, H, E)
    lab_feats = jax.block_until_ready(lab_feats)

    # Glue: mm_input = cat(lab_feats, embed_tokens(text input ids)) along seq axis.
    embed_table = jax.random.normal(ks[14], (vocab, d_llm), jnp.float32) * 0.02
    text_ids = (jnp.arange(B * T).reshape(B, T) * 7) % vocab
    mm_input = jnp.concatenate([lab_feats, embed_table[text_ids]], axis=1)
    lab_feats_mask = jnp.ones((B, L), dtype=jnp.int32)
    mm_mask = jnp.concatenate([lab_feats_mask, jnp.ones((B, T), jnp.int32)], axis=1)
    # TODO(synk): t5_decoder(inputs_embeds=..., labels=...) -> loss_gen / loss_lm
    # requires the pretrained T5 model and is not reproduced here.

    # Tolerance covers the (mathematically exact) lab_proj/query fusion, whose
    # bf16 rounding point differs slightly from the unfused reference path.
    ref = reference(lab_feats_in, src_emb, params, H, E)
    assert jnp.allclose(lab_feats, ref, atol=2e-2, rtol=2e-2), "mismatch vs reference"
    jax.block_until_ready(mm_input)
    jax.block_until_ready(mm_mask)
    print("KERNEL_OK")
</pallas_src>

<mosaic_0001>
module attributes {stable_mosaic.version = 11 : i64} {
  func.func @kv_proj_kernel(%arg0: memref<8x32xbf16, #tpu.memory_space<vmem>>, %arg1: memref<32x32xbf16, #tpu.memory_space<vmem>>, %arg2: memref<1x32xf32, #tpu.memory_space<vmem>>, %arg3: memref<32x32xbf16, #tpu.memory_space<vmem>>, %arg4: memref<1x32xf32, #tpu.memory_space<vmem>>, %arg5: memref<8x32xbf16, #tpu.memory_space<vmem>>, %arg6: memref<8x32xbf16, #tpu.memory_space<vmem>>) attributes {dimension_semantics = [], scalar_prefetch = 0 : i64, scratch_operands = 0 : i64, tpu.core_type = #tpu.core_type<tc>} {
    %c0 = arith.constant 0 : index
    %c0_0 = arith.constant 0 : index
    %0 = vector.load %arg0[%c0, %c0_0] : memref<8x32xbf16, #tpu.memory_space<vmem>>, vector<8x32xbf16>
    %c0_1 = arith.constant 0 : index
    %c0_2 = arith.constant 0 : index
    %1 = vector.load %arg1[%c0_1, %c0_2] : memref<32x32xbf16, #tpu.memory_space<vmem>>, vector<32x32xbf16>
    %cst = arith.constant dense<0.000000e+00> : vector<8x32xf32>
    %2 = tpu.matmul %0, %1, %cst {dimension_numbers = #tpu.dot_dimension_numbers<[1], [0], [0], [1], [0, 0, 1, 1], [], []>} : vector<8x32xbf16>, vector<32x32xbf16>, vector<8x32xf32> -> vector<8x32xf32>
    %c0_3 = arith.constant 0 : index
    %c0_4 = arith.constant 0 : index
    %3 = vector.load %arg2[%c0_3, %c0_4] : memref<1x32xf32, #tpu.memory_space<vmem>>, vector<1x32xf32>
    %4 = vector.broadcast %3 : vector<1x32xf32> to vector<8x32xf32>
    %5 = arith.addf %2, %4 : vector<8x32xf32>
    %c0_5 = arith.constant 0 : index
    %c0_6 = arith.constant 0 : index
    %6 = vector.load %arg3[%c0_5, %c0_6] : memref<32x32xbf16, #tpu.memory_space<vmem>>, vector<32x32xbf16>
    %cst_7 = arith.constant dense<0.000000e+00> : vector<8x32xf32>
    %7 = tpu.matmul %0, %6, %cst_7 {dimension_numbers = #tpu.dot_dimension_numbers<[1], [0], [0], [1], [0, 0, 1, 1], [], []>} : vector<8x32xbf16>, vector<32x32xbf16>, vector<8x32xf32> -> vector<8x32xf32>
    %c0_8 = arith.constant 0 : index
    %c0_9 = arith.constant 0 : index
    %8 = vector.load %arg4[%c0_8, %c0_9] : memref<1x32xf32, #tpu.memory_space<vmem>>, vector<1x32xf32>
    %9 = vector.broadcast %8 : vector<1x32xf32> to vector<8x32xf32>
    %10 = arith.addf %7, %9 : vector<8x32xf32>
    %11 = arith.truncf %5 : vector<8x32xf32> to vector<8x32xbf16>
    %c0_10 = arith.constant 0 : index
    %c0_11 = arith.constant 0 : index
    %12 = vector.load %arg5[%c0_10, %c0_11] : memref<8x32xbf16, #tpu.memory_space<vmem>>, vector<8x32xbf16>
    tpu.vector_store %arg5[%c0_10, %c0_11], %11 {strides = array<i32>} : memref<8x32xbf16, #tpu.memory_space<vmem>>, vector<8x32xbf16>,
    %13 = arith.truncf %10 : vector<8x32xf32> to vector<8x32xbf16>
    %c0_12 = arith.constant 0 : index
    %c0_13 = arith.constant 0 : index
    %14 = vector.load %arg6[%c0_12, %c0_13] : memref<8x32xbf16, #tpu.memory_space<vmem>>, vector<8x32xbf16>
    tpu.vector_store %arg6[%c0_12, %c0_13], %13 {strides = array<i32>} : memref<8x32xbf16, #tpu.memory_space<vmem>>, vector<8x32xbf16>,
    return
  }
}

</mosaic_0001>

<bundles_post_ra>
// kernel: tpu_custom_call.1
= control target key start
LH: loop header
LB: loop body
LE: loop exit
PB: predicated region body
PF: predicated region fallthrough
CT: control target
= control target key end

     0   :  { %12 = vsyncpa [#allocation3], 0  ;;  %s448_s0 = inlined_call_operand.hbm [shape: bf16[8,32], index: 0, kind: input, shape index: {}]   ;;  %s449_s1 = inlined_call_operand.hbm [shape: bf16[32,32], index: 1, kind: input, shape index: {}]   ;;  %s450_s2 = inlined_call_operand.vmem [shape: f32[1,32], index: 2, kind: input, shape index: {}]   ;;  %s451_s3 = inlined_call_operand.hbm [shape: bf16[32,32], index: 3, kind: input, shape index: {}]   ;;  %s452_s4 = inlined_call_operand.vmem [shape: f32[1,32], index: 4, kind: input, shape index: {}]   ;;  %s453_s5 = inlined_call_operand.hbm [shape: bf16[8,32], index: 5, kind: output, shape index: {0}]   ;;  %s454_s6 = inlined_call_operand.hbm [shape: bf16[8,32], index: 6, kind: output, shape index: {1}]  }
   0x1   :  { %13 = vsyncpa [#allocation6], 0 }
   0x2   :  { %14 = vsyncpa [#allocation4], 0 }
   0x3   :  { %15 = vsyncpa [#allocation10], 0  ;;  %s381_s21 = smov [#allocation5]  }
   0x4   :  { %s31_s22 = sshll.u32 %s381_s21, 4  ;;  %s32_s22 = int_to_ptr.vmem [resolvable:$true] %s31_s22 }
   0x5   :  { %s281_s23 = scalar_lea.vmem %s32_s22, 256  ;;  %p286_p1 = scmp.lt.s32.totalorder %s32_s22, %s32_s22 }
   0x6   :  { %p282_p0 = scmp.ne.s32.totalorder %s32_s22, %s281_s23  ;;  %p287_p2 = scmp.lt.s32.totalorder %s281_s23, %s281_s23 }
   0x8   :  { %p288_p3 = por %p287_p2, %p286_p1 }
   0xa   :  { %p289_p4 = pnand %p288_p3, %p282_p0 }
   0xc   :  { %292 = shalt.err (!%p289_p4)
}
   0xd   :  { %s382_s24 = smov 64   ;;  %s383_s25 = smov 4  }
   0xe   :  { %37 = dma.hbm_to_vmem [thread:$0]  %s449_s1, 256, %s32_s22, [#allocation6], %s382_s24, %s382_s24, %s383_s25  }
   0xf   :  { %s384_s28 = smov [#allocation2]   ;;  %s385_s30 = smov [#allocation7]  }
  0x10   :  { %s22_s29 = sshll.u32 %s384_s28, 4  ;;  %s45_s7 = sshll.u32 %s385_s30, 4  ;;  %s23_s29 = int_to_ptr.vmem [resolvable:$true] %s22_s29  ;;  %s46_s7 = int_to_ptr.vmem [resolvable:$true] %s45_s7 }
  0x11   :  { %s301_s8 = scalar_lea.vmem %s23_s29, 64  ;;  %p306_p6 = scmp.lt.s32.totalorder %s23_s29, %s23_s29 }
  0x12   :  { %p302_p5 = scmp.ne.s32.totalorder %s23_s29, %s301_s8  ;;  %p307_p7 = scmp.lt.s32.totalorder %s301_s8, %s301_s8 }
  0x14   :  { %p308_p8 = por %p307_p7, %p306_p6 }
  0x16   :  { %p309_p9 = pnand %p308_p8, %p302_p5 }
  0x18   :  { %312 = shalt.err (!%p309_p9)
}
  0x19   :  { %25 = dma.hbm_to_vmem [thread:$0]  %s448_s0, 64, %s23_s29, [#allocation3]  }
  0x1a   :  { %s321_s11 = scalar_lea.vmem %s46_s7, 256  ;;  %p326_p11 = scmp.lt.s32.totalorder %s46_s7, %s46_s7 }
  0x1b   :  { %p322_p10 = scmp.ne.s32.totalorder %s46_s7, %s321_s11  ;;  %p327_p12 = scmp.lt.s32.totalorder %s321_s11, %s321_s11 }
  0x1d   :  { %p328_p13 = por %p327_p12, %p326_p11 }
  0x1f   :  { %p329_p0 = pnand %p328_p13, %p322_p10 }
  0x21   :  { %332 = shalt.err (!%p329_p0)
}
  0x22   :  { %51 = dma.hbm_to_vmem [thread:$0]  %s451_s3, 256, %s46_s7, [#allocation6], %s382_s24, %s382_s24, %s383_s25  }
  0x23   :  { %373 = dma.done.wait [#allocation3], 64  }
  0x24   :  { %374 = vsyncadd [#allocation3], 4294967232 }
  0x25   :  { %375 = dma.done.wait [#allocation6], 512  }
  0x26   :  { %376 = vsyncadd [#allocation6], 4294966784  ;;  %v386_v0 = vmov 0.0   ;;  %vm387_vm0 = vmmov 0   ;;  %v269_v1 = vld [vmem:[#allocation5 + $0x8] sm:$0xff]   ;;  %v270_v2 = vld [vmem:[#allocation7 + $0x8] sm:$0xff]  }
  0x27   :  { %244 = vmatprep.subr.bf16.mxu0 %v386_v0  ;;  %252 = vmatprep.subr.bf16.mxu1 %v386_v0  ;;  %v271_v3 = vld [vmem:[#allocation5] sm:$0xff]   ;;  %v272_v4 = vld [vmem:[#allocation7] sm:$0xff]   ;;  %v64_v5 = vld [vmem:[#allocation2] sm:$0xf]  ;;  %vm88_vm1 = vcmask 261120   ;;  %s388_s15 = smov [#allocation8]  }
  0x28   :  { %248 = vmatprep.mubr.msk.bf16.mxu0 %vm387_vm0, %v386_v0  ;;  %256 = vmatprep.mubr.msk.bf16.mxu1 %vm387_vm0, %v386_v0  ;;  %v230_v6 = vld [vmem:[%s450_s2] ss:$0 sm:$0xff]  ;;  %s206_s16 = sshll.u32 %s388_s15, 4  ;;  %s389_s17 = smov [#allocation9]   ;;  %vm196_vm2 = vcmask 257024   ;;  %s207_s16 = int_to_ptr.vmem [resolvable:$true] %s206_s16 }
  0x29   :  { %245 = vmatpush3.bf16.msra.mxu0 %v269_v1  ;;  %253 = vmatpush3.bf16.msra.mxu1 %v270_v2  ;;  %v234_v7 = vld [vmem:[%s452_s4] ss:$0 sm:$0xff]  ;;  %s216_s18 = sshll.u32 %s389_s17, 4  ;;  %s333_s2 = scalar_lea.vmem %s207_s16, 64  ;;  %s217_s18 = int_to_ptr.vmem [resolvable:$true] %s216_s18 }
  0x2a   :  { %246 = vmatprep.subr.bf16.mxu0 %v386_v0  ;;  %254 = vmatprep.subr.bf16.mxu1 %v386_v0  ;;  %p334_p1 = scmp.ne.s32.totalorder %s207_s16, %s333_s2  ;;  %p338_p2 = scmp.lt.s32.totalorder %s207_s16, %s207_s16 }
  0x2b   :  { %p339_p3 = scmp.lt.s32.totalorder %s333_s2, %s333_s2 }
  0x2d   :  { %247 = vmatpush3.bf16.msra.mxu0 %v271_v3  ;;  %255 = vmatpush3.bf16.msra.mxu1 %v272_v4  ;;  %p340_p4 = por %p339_p3, %p338_p2 }
  0x2f   :  { %p341_p5 = pnand %p340_p4, %p334_p1 }
  0x30   :  { %249 = vmatmul.mubr.msk.bf16.vlgmr.msra.gmra.mxu0 %vm88_vm1, %v64_v5  ;;  %257 = vmatmul.mubr.msk.bf16.vlgmr.msra.gmra.mxu1 %vm88_vm1, %v64_v5 }
  0xf0   :  { %v126_v8 = vpop.f32.mrf.mxu0  ;;  %v189_v10 = vpop.f32.mrf.mxu1 }
  0xf1   :  { %v127_v9 = vadd.f32 %v230_v6, %v126_v8  ;;  %v190_v11 = vadd.f32 %v234_v7, %v189_v10 }
  0xf2   :  { %v250_v12 = vpop.f32.mrf.mxu0  ;;  %v258_v14 = vpop.f32.mrf.mxu1 }
  0xf3   :  { %v195_v13 = vpack.c.bf16 %v127_v9, %v127_v9  ;;  %v198_v15 = vpack.c.bf16 %v190_v11, %v190_v11 }
  0xf4   :  { %v129_v16 = vpop.f32.mrf.mxu0  ;;  %v192_v17 = vpop.f32.mrf.mxu1 }
  0xf5   :  { %197 = vst.msk [vmem:[#allocation8] sm:$0xf] %vm196_vm2, %v195_v13 }
  0xf6   :  { %v251_v18 = vpop.f32.mrf.mxu0 }
  0xf7   :  { %344 = shalt.err (!%p341_p5)
}
  0xf8   :  { %209 = dma.vmem_to_hbm [thread:$0]  %s207_s16, 64, %s453_s5, [#allocation4]   ;;  %199 = vst.msk [vmem:[#allocation9] sm:$0xf] %vm196_vm2, %v198_v15  ;;  %v259_v19 = vpop.f32.mrf.mxu1 }
  0xf9   :  { %s353_s20 = scalar_lea.vmem %s217_s18, 64  ;;  %p358_p7 = scmp.lt.s32.totalorder %s217_s18, %s217_s18 }
  0xfa   :  { %p354_p6 = scmp.ne.s32.totalorder %s217_s18, %s353_s20  ;;  %p359_p8 = scmp.lt.s32.totalorder %s353_s20, %s353_s20 }
  0xfc   :  { %p360_p9 = por %p359_p8, %p358_p7 }
  0xfe   :  { %p361_p10 = pnand %p360_p9, %p354_p6 }
 0x100   :  { %364 = shalt.err (!%p361_p10)
}
 0x101   :  { %219 = dma.vmem_to_hbm [thread:$0]  %s217_s18, 64, %s454_s6, [#allocation10]  }
 0x102   :  { %377 = dma.done.wait [#allocation4], 64  }
 0x103   :  { %378 = vsyncadd [#allocation4], 4294967232 }
 0x104   :  { %379 = dma.done.wait [#allocation10], 64  }
 0x105   :  { %380 = vsyncadd [#allocation10], 4294967232 }
 0x106   :  { %226 = vsyncpa [#allocation3], 1 }
 0x107   :  { %227 = vsyncpa [#allocation6], 1 }
 0x108   :  { %228 = vsyncpa [#allocation4], 1 }
 0x109   :  { %229 = vsyncpa [#allocation10], 1 }

</bundles_post_ra>
